<compile_context>
chip_gen: v5e
topology: v5e:2x2
jax: 0.10.0
libtpu: 0.0.40
codegen_flags: <defaults>
</compile_context>

<pallas_src>
import functools
import math

import jax
import jax.numpy as jnp
import numpy as np
from jax.experimental import pallas as pl
from jax.experimental.pallas import tpu as pltpu


def _col_row_masks(H, W):
    """Boundary masks at shape (1, H*W); broadcast over rows by jnp.where."""
    L = H * W
    idx = jax.lax.broadcasted_iota(jnp.int32, (1, L), 1)
    if W & (W - 1) == 0:
        col = idx & (W - 1)
    else:
        col = idx % W
    col0 = col == 0
    colW = col == (W - 1)
    row0 = idx < W
    rowH = idx >= (L - W)
    return col0, colW, row0, rowH


def _hpf_sep_kernel(x_ref, o_ref, *, H, W, h_taps, v_taps):
    """Separable path.  x_ref/o_ref: (R, H*W); every row is one whole flattened image.
    h_taps / v_taps: 3 Python floats each, filter = outer(v_taps, h_taps)."""
    L = H * W
    x = x_ref[...].astype(jnp.float32)
    col0, colW, row0, rowH = _col_row_masks(H, W)

    def rot(a, s):
        # cyclic shift along the flattened lane axis; rot(a, s)[p] == a[(p - s) % L]
        return pltpu.roll(a, s % L, axis=1)

    # Horizontal 3-tap with reflect at w == 0 / w == W-1.
    xm = rot(x, 1)                              # x[h, w-1] in the interior
    xp = rot(x, -1)                             # x[h, w+1] in the interior
    left = jnp.where(col0, xp, xm)              # reflect: left of col 0 is col 1
    right = jnp.where(colW, xm, xp)             # reflect: right of col W-1 is col W-2
    t = h_taps[0] * left + h_taps[1] * x + h_taps[2] * right

    # Vertical 3-tap on the horizontal result with reflect at h == 0 / h == H-1.
    tm = rot(t, W)                              # row h-1 in the interior
    tp = rot(t, -W)                             # row h+1 in the interior
    up = jnp.where(row0, tp, tm)
    down = jnp.where(rowH, tm, tp)
    acc = v_taps[0] * up + v_taps[1] * t + v_taps[2] * down

    o_ref[...] = acc.astype(o_ref.dtype)


def _hpf_gen_kernel(x_ref, o_ref, *, H, W, taps):
    """Generic (non-separable) 3x3 path; taps row-major, boundary masks hoisted."""
    L = H * W
    x = x_ref[...].astype(jnp.float32)
    col0, colW, row0, rowH = _col_row_masks(H, W)

    def rot(a, s):
        return pltpu.roll(a, s % L, axis=1)

    xm = rot(x, 1)
    xp = rot(x, -1)
    left = jnp.where(col0, xp, xm)
    right = jnp.where(colW, xm, xp)

    acc = jnp.zeros_like(x)
    for dx, a in enumerate((left, x, right)):
        am = rot(a, W)
        ap = rot(a, -W)
        up = jnp.where(row0, ap, am)
        down = jnp.where(rowH, am, ap)
        acc = acc + taps[0 * 3 + dx] * up + taps[1 * 3 + dx] * a + taps[2 * 3 + dx] * down

    o_ref[...] = acc.astype(o_ref.dtype)


def high_pass_filter(x, weight, *, band_budget_bytes=4 << 20):
    """x: (N, C, H, W) float; weight: (C, 1, 3, 3) depthwise filter.

    Reproduces HighPassFilter.forward (stride 1): reflect pad of 1 on each spatial side
    followed by a depthwise (groups=C) 3x3 conv, no bias -> output (N, C, H, W).
    """
    N, C, H, W = x.shape
    assert H >= 2 and W >= 2, "reflect padding of 1 requires H, W >= 2"
    L = H * W
    NC = N * C
    itemsize = jnp.dtype(x.dtype).itemsize

    # The module uses one shared 3x3 filter for every channel; the kernel bakes its taps
    # as constants, so enforce that assumption at trace time.
    w_np = np.asarray(weight, dtype=np.float64).reshape(C, 3, 3)
    assert np.allclose(w_np, w_np[0:1]), "kernel assumes all channels share one 3x3 filter"
    w3 = w_np[0]

    # Rank-1 (separable) detection at trace time.
    U, S, Vt = np.linalg.svd(w3)
    sep = False
    if S[0] == 0.0:
        sep, h_taps, v_taps = True, (0.0, 0.0, 0.0), (0.0, 0.0, 0.0)
    else:
        s = math.sqrt(S[0])
        vv, uu = U[:, 0] * s, Vt[0] * s
        if np.allclose(np.outer(vv, uu), w3, rtol=1e-6, atol=1e-6 * S[0]):
            sep = True
            v_taps = tuple(float(t) for t in vv)   # vertical taps (dy = -1, 0, +1)
            h_taps = tuple(float(t) for t in uu)   # horizontal taps (dx = -1, 0, +1)

    if sep:
        kernel = functools.partial(_hpf_sep_kernel, H=H, W=W, h_taps=h_taps, v_taps=v_taps)
    else:
        taps = tuple(float(t) for t in w3.reshape(-1))
        kernel = functools.partial(_hpf_gen_kernel, H=H, W=W, taps=taps)

    # Free (row-major) reshape: each row of the (N*C, H*W) view is one whole image, so
    # banding along the row axis needs no halo and keeps the reflect/roll logic intact.
    x_flat = x.reshape(NC, L)

    # Pick rows-per-block: one block for small inputs, else the largest multiple of 8
    # that divides N*C and fits the band budget (keeps default scoped VMEM happy on
    # v5e/v6e/v7x; multiple bands also let v7x's 2 TensorCores run in parallel).
    if NC * L * itemsize <= band_budget_bytes or NC % 8 != 0:
        rb = NC
    else:
        rb = 8
        for r in range(NC, 7, -8):
            if NC % r == 0 and r * L * itemsize <= band_budget_bytes:
                rb = r
                break
    n_bands = NC // rb

    cp_kwargs = {"dimension_semantics": ("parallel",)}
    # Rough per-step VMEM estimate: double-buffered in+out blocks + ~5 live f32 temps.
    est_vmem = rb * L * (4 * itemsize + 24)
    if est_vmem > (14 << 20):
        cp_kwargs["vmem_limit_bytes"] = int(min(est_vmem + (2 << 20), 64 << 20))
    # TODO(synk): if a single row (H*W) is so large that even rb=8 (or an indivisible
    # N*C) exceeds VMEM, band the lane axis in Hb*W chunks with a 1-row halo.

    out_flat = pl.pallas_call(
        kernel,
        out_shape=jax.ShapeDtypeStruct((NC, L), x.dtype),
        grid=(n_bands,),
        in_specs=[pl.BlockSpec((rb, L), lambda i: (i, 0))],
        out_specs=pl.BlockSpec((rb, L), lambda i: (i, 0)),
        compiler_params=pltpu.CompilerParams(**cp_kwargs),
    )(x_flat)
    return out_flat.reshape(N, C, H, W)


def make_weight(channels=3):
    # Deterministic weight exactly as in HighPassFilter.__init__
    k = jnp.array(
        [[-1.0, 2.0, -1.0],
         [2.0, -4.0, 2.0],
         [-1.0, 2.0, -1.0]], dtype=jnp.float32)
    return jnp.broadcast_to(k, (channels, 1, 3, 3)).astype(jnp.float32)


def _reference(x, weight):
    # Pure-JAX reference: reflect pad + grouped (depthwise) conv.
    xp = jnp.pad(x, ((0, 0), (0, 0), (1, 1), (1, 1)), mode="reflect")
    C = x.shape[1]
    return jax.lax.conv_general_dilated(
        xp, weight, window_strides=(1, 1), padding="VALID",
        dimension_numbers=("NCHW", "OIHW", "NCHW"),
        feature_group_count=C,
    )


if __name__ == "__main__":
    key = jax.random.PRNGKey(0)
    N, C, H, W = 2, 3, 16, 16  # module hardcodes 3 channels
    x = jax.random.normal(key, (N, C, H, W), dtype=jnp.float32)
    weight = make_weight(C)

    out = jax.block_until_ready(high_pass_filter(x, weight))
    ref = jax.block_until_ready(_reference(x, weight))

    assert out.shape == (N, C, H, W)
    assert jnp.allclose(out, ref, atol=1e-4, rtol=1e-4)
    print("KERNEL_OK")
</pallas_src>

<mosaic_0001>
module attributes {stable_mosaic.version = 11 : i64} {
  func.func @_hpf_sep_kernel(%arg0: i32, %arg1: memref<6x256xf32, #tpu.memory_space<vmem>>, %arg2: memref<6x256xf32, #tpu.memory_space<vmem>>) attributes {dimension_semantics = [#tpu.dimension_semantics<parallel>], iteration_bounds = array<i64: 1>, scalar_prefetch = 0 : i64, scratch_operands = 0 : i64, tpu.core_type = #tpu.core_type<tc>, window_params = [{transform_indices = @transform_0, window_bounds = array<i64: 6, 256>}, {transform_indices = @transform_1, window_bounds = array<i64: 6, 256>}]} {
    %c0 = arith.constant 0 : index
    %c0_0 = arith.constant 0 : index
    %0 = vector.load %arg1[%c0, %c0_0] : memref<6x256xf32, #tpu.memory_space<vmem>>, vector<6x256xf32>
    %1 = tpu.iota {dimensions = array<i32: 1>} : vector<1x256xi32>
    %c15_i32 = arith.constant 15 : i32
    %2 = vector.broadcast %c15_i32 : i32 to vector<1x256xi32>
    %3 = arith.andi %1, %2 : vector<1x256xi32>
    %c0_i32 = arith.constant 0 : i32
    %4 = vector.broadcast %c0_i32 : i32 to vector<1x256xi32>
    %5 = arith.cmpi eq, %3, %4 : vector<1x256xi32>
    %c15_i32_1 = arith.constant 15 : i32
    %6 = vector.broadcast %c15_i32_1 : i32 to vector<1x256xi32>
    %7 = arith.cmpi eq, %3, %6 : vector<1x256xi32>
    %c16_i32 = arith.constant 16 : i32
    %8 = vector.broadcast %c16_i32 : i32 to vector<1x256xi32>
    %9 = arith.cmpi slt, %1, %8 : vector<1x256xi32>
    %c240_i32 = arith.constant 240 : i32
    %10 = vector.broadcast %c240_i32 : i32 to vector<1x256xi32>
    %11 = arith.cmpi sge, %1, %10 : vector<1x256xi32>
    %c1_i32 = arith.constant 1 : i32
    %12 = tpu.dynamic_rotate %0 by %c1_i32 dim 1 : vector<6x256xf32>, i32 -> vector<6x256xf32>
    %c255_i32 = arith.constant 255 : i32
    %13 = tpu.dynamic_rotate %0 by %c255_i32 dim 1 : vector<6x256xf32>, i32 -> vector<6x256xf32>
    %14 = vector.shape_cast %5 : vector<1x256xi1> to vector<1x256xi1>
    %15 = vector.broadcast %14 : vector<1x256xi1> to vector<6x256xi1>
    %16 = arith.select %15, %13, %12 : vector<6x256xi1>, vector<6x256xf32>
    %17 = vector.shape_cast %7 : vector<1x256xi1> to vector<1x256xi1>
    %18 = vector.broadcast %17 : vector<1x256xi1> to vector<6x256xi1>
    %19 = arith.select %18, %12, %13 : vector<6x256xi1>, vector<6x256xf32>
    %cst = arith.constant 1.000000e+00 : f32
    %20 = vector.broadcast %cst : f32 to vector<6x256xf32>
    %21 = arith.mulf %20, %16 : vector<6x256xf32>
    %cst_2 = arith.constant -2.000000e+00 : f32
    %22 = vector.broadcast %cst_2 : f32 to vector<6x256xf32>
    %23 = arith.mulf %22, %0 : vector<6x256xf32>
    %24 = arith.addf %21, %23 : vector<6x256xf32>
    %cst_3 = arith.constant 1.000000e+00 : f32
    %25 = vector.broadcast %cst_3 : f32 to vector<6x256xf32>
    %26 = arith.mulf %25, %19 : vector<6x256xf32>
    %27 = arith.addf %24, %26 : vector<6x256xf32>
    %c16_i32_4 = arith.constant 16 : i32
    %28 = tpu.dynamic_rotate %27 by %c16_i32_4 dim 1 : vector<6x256xf32>, i32 -> vector<6x256xf32>
    %c240_i32_5 = arith.constant 240 : i32
    %29 = tpu.dynamic_rotate %27 by %c240_i32_5 dim 1 : vector<6x256xf32>, i32 -> vector<6x256xf32>
    %30 = vector.shape_cast %9 : vector<1x256xi1> to vector<1x256xi1>
    %31 = vector.broadcast %30 : vector<1x256xi1> to vector<6x256xi1>
    %32 = arith.select %31, %29, %28 : vector<6x256xi1>, vector<6x256xf32>
    %33 = vector.shape_cast %11 : vector<1x256xi1> to vector<1x256xi1>
    %34 = vector.broadcast %33 : vector<1x256xi1> to vector<6x256xi1>
    %35 = arith.select %34, %28, %29 : vector<6x256xi1>, vector<6x256xf32>
    %cst_6 = arith.constant -1.000000e+00 : f32
    %36 = vector.broadcast %cst_6 : f32 to vector<6x256xf32>
    %37 = arith.mulf %36, %32 : vector<6x256xf32>
    %cst_7 = arith.constant 2.000000e+00 : f32
    %38 = vector.broadcast %cst_7 : f32 to vector<6x256xf32>
    %39 = arith.mulf %38, %27 : vector<6x256xf32>
    %40 = arith.addf %37, %39 : vector<6x256xf32>
    %cst_8 = arith.constant -1.000000e+00 : f32
    %41 = vector.broadcast %cst_8 : f32 to vector<6x256xf32>
    %42 = arith.mulf %41, %35 : vector<6x256xf32>
    %43 = arith.addf %40, %42 : vector<6x256xf32>
    %c0_9 = arith.constant 0 : index
    %c0_10 = arith.constant 0 : index
    %44 = vector.load %arg2[%c0_9, %c0_10] : memref<6x256xf32, #tpu.memory_space<vmem>>, vector<6x256xf32>
    tpu.vector_store %arg2[%c0_9, %c0_10], %43 {strides = array<i32>} : memref<6x256xf32, #tpu.memory_space<vmem>>, vector<6x256xf32>,
    return
  }
  func.func @transform_0(%arg0: i32) -> (i32, i32) {
    %c0_i32 = arith.constant 0 : i32
    %c0_i32_0 = arith.constant 0 : i32
    return %arg0, %c0_i32 : i32, i32
  }
  func.func @transform_1(%arg0: i32) -> (i32, i32) {
    %c0_i32 = arith.constant 0 : i32
    %c0_i32_0 = arith.constant 0 : i32
    return %arg0, %c0_i32 : i32, i32
  }
}

</mosaic_0001>

<bundles_post_ra>
// kernel: tpu_custom_call.1
= control target key start
LH: loop header
LB: loop body
LE: loop exit
PB: predicated region body
PF: predicated region fallthrough
CT: control target
= control target key end

     0   :  { %6 = vsyncpa [#allocation3], 0  ;;  %s204_s0 = inlined_call_operand.hbm [shape: f32[6,256], index: 0, kind: input, shape index: {}]   ;;  %s205_s1 = inlined_call_operand.hbm [shape: f32[6,256], index: 1, kind: output, shape index: {}]  }
   0x1   :  { %7 = vsyncpa [#allocation4], 0  ;;  %s13_s8 = sshll.u32 %s204_s0, 4  ;;  %s182_s9 = smov [#allocation2]   ;;  %s14_s8 = int_to_ptr.hbm [resolvable:$true] %s13_s8 }
   0x2   :  { %s15_s10 = sshll.u32 %s182_s9, 4  ;;  %s16_s10 = int_to_ptr.vmem [resolvable:$true] %s15_s10 }
   0x3   :  { %18 = dma.hbm_to_vmem [thread:$0]  %s14_s8, 256, %s16_s10, [#allocation3]  }
   0x4   :  { %178 = dma.done.wait [#allocation3], 256  }
   0x5   :  { %179 = vsyncadd [#allocation3], 4294967040  ;;  %v23_v0 = vld [vmem:[#allocation2] sm:$0x3f]  ;;  %s183_s11 = smov 127   ;;  %s184_s12 = smov 1   ;;  %v25_v2 = vlaneseq }
   0x6   :  { %45 = vrot.lane.b32.xlu1 %v23_v0, %s183_s11  ;;  %38 = vrot.lane.b32.xlu0 %v23_v0, %s184_s12  ;;  %v24_v1 = vld [vmem:[#allocation2 + $0x8] sm:$0x3f]  ;;  %v64_v9 = vmul.f32 -2.0, %v23_v0  ;;  %s185_s0 = smov 112   ;;  %s186_s13 = smov 16  }
   0x7   :  { %v26_v3 = vand.u32 127, %v25_v2  ;;  %v65_v10 = vmul.f32 -2.0, %v24_v1  ;;  %s187_s14 = smov [#allocation5]   ;;  %s114_s18 = sshll.u32 %s205_s1, 4  ;;  %s115_s18 = int_to_ptr.hbm [resolvable:$true] %s114_s18 }
   0x8   :  { %s112_s15 = sshll.u32 %s187_s14, 4  ;;  %s113_s15 = int_to_ptr.vmem [resolvable:$true] %s112_s15 }
   0x9   :  { %v27_v4 = vadd.s32 128, %v26_v3  ;;  %v28_v7 = vand.u32 15, %v26_v3  ;;  %vm49_vm0 = vcmp.lt.s32.totalorder %v26_v3, 127  ;;  %vm42_vm1 = vcmp.lt.s32.totalorder %v26_v3, 1 }
   0xa   :  { %vm34_vm6 = vcmp.lt.s32.totalorder %v26_v3, 16  ;;  %vm80_vm7 = vcmp.lt.s32.totalorder %v26_v3, 112 }
   0xb   :  { %v29_v8 = vand.u32 15, %v27_v4  ;;  %vm30_vm2 = vcmp.eq.s32.totalorder %v28_v7, 0  ;;  %vm32_vm4 = vcmp.eq.s32.totalorder %v28_v7, 15  ;;  %vm37_vm8 = vcmp.ge.s32.totalorder %v27_v4, 240 }
   0xd   :  { %vm31_vm3 = vcmp.eq.s32.totalorder %v29_v8, 0  ;;  %vm33_vm5 = vcmp.eq.s32.totalorder %v29_v8, 15 }
   0xe   :  { %47 = vrot.lane.b32.xlu1 %v24_v1, %s183_s11  ;;  %40 = vrot.lane.b32.xlu0 %v24_v1, %s184_s12 }
  0x78   :  { %v46_v5 = vpop.permute.xlu1 %45  ;;  %v39_v6 = vpop.permute.xlu0 %38 }
  0x80   :  { %v48_v11 = vpop.permute.xlu1 %47  ;;  %v41_v12 = vpop.permute.xlu0 %40 }
  0x81   :  { %v50_v13 = vsel %vm49_vm0, %v46_v5, %v48_v11  ;;  %v51_v14 = vsel %vm49_vm0, %v48_v11, %v46_v5  ;;  %v43_v15 = vsel %vm42_vm1, %v39_v6, %v41_v12  ;;  %v44_v16 = vsel %vm42_vm1, %v41_v12, %v39_v6 }
  0x82   :  { %v56_v17 = vsel %vm30_vm2, %v50_v13, %v44_v16  ;;  %v57_v18 = vsel %vm31_vm3, %v51_v14, %v43_v15  ;;  %v62_v21 = vsel %vm32_vm4, %v44_v16, %v50_v13  ;;  %v63_v22 = vsel %vm33_vm5, %v43_v15, %v51_v14 }
  0x83   :  { %v66_v19 = vadd.f32 %v64_v9, %v56_v17  ;;  %v67_v20 = vadd.f32 %v65_v10, %v57_v18 }
  0x85   :  { %v69_v23 = vadd.f32 %v67_v20, %v63_v22  ;;  %v68_v24 = vadd.f32 %v66_v19, %v62_v21 }
  0x87   :  { %78 = vrot.lane.b32.xlu1 %v69_v23, %s185_s0  ;;  %76 = vrot.lane.b32.xlu0 %v68_v24, %s185_s0  ;;  %v98_v31 = vmul.f32 2.0, %v69_v23  ;;  %v97_v39 = vmul.f32 2.0, %v68_v24 }
  0x88   :  { %70 = vrot.lane.b32.xlu2 %v68_v24, %s186_s13 }
  0x90   :  { %72 = vrot.lane.b32.xlu2 %v69_v23, %s186_s13 }
  0xe2   :  { %v71_v25 = vpop.permute.xlu2 %70 }
  0xea   :  { %v73_v26 = vpop.permute.xlu2 %72 }
  0xeb   :  { %v74_v27 = vsel %vm34_vm6, %v71_v25, %v73_v26  ;;  %v75_v32 = vsel %vm34_vm6, %v73_v26, %v71_v25 }
  0xec   :  { %v96_v28 = vmul.f32 -1.0, %v74_v27 }
  0xee   :  { %v100_v37 = vadd.f32 %v98_v31, %v96_v28 }
  0xf9   :  { %v79_v29 = vpop.permute.xlu1 %78  ;;  %v77_v30 = vpop.permute.xlu0 %76 }
  0xfa   :  { %v81_v33 = vsel %vm80_vm7, %v77_v30, %v79_v29  ;;  %v82_v34 = vsel %vm80_vm7, %v79_v29, %v77_v30 }
  0xfb   :  { %v87_v35 = vsel %vm34_vm6, %v81_v33, %v75_v32  ;;  %v94_v36 = vsel %vm37_vm8, %v74_v27, %v82_v34  ;;  %v101_v42 = vmul.f32 -1.0, %v81_v33 }
  0xfc   :  { %v95_v38 = vmul.f32 -1.0, %v87_v35  ;;  %v102_v40 = vmul.f32 -1.0, %v94_v36 }
  0xfe   :  { %v99_v41 = vadd.f32 %v97_v39, %v95_v38  ;;  %v104_v43 = vadd.f32 %v102_v40, %v100_v37 }
 0x100   :  { %v103_v44 = vadd.f32 %v101_v42, %v99_v41  ;;  %106 = vst [vmem:[#allocation5 + $0x8] sm:$0x3f] %v104_v43 }
 0x102   :  { %105 = vst [vmem:[#allocation5] sm:$0x3f] %v103_v44 }
 0x103   :  { %117 = dma.vmem_to_hbm [thread:$0]  %s113_s15, 256, %s115_s18, [#allocation4]  }
 0x104   :  { %180 = dma.done.wait [#allocation4], 256  }
 0x105   :  { %181 = vsyncadd [#allocation4], 4294967040 }
 0x106   :  { %122 = vsyncpa [#allocation3], 1 }
 0x107   :  { %123 = vsyncpa [#allocation4], 1 }

</bundles_post_ra>
